<compile_context>
chip_gen: v7x
topology: tpu7x:2x2x1
jax: 0.10.0
libtpu: 0.0.40
codegen_flags: <defaults>
</compile_context>

<pallas_src>
import math

import jax
import jax.numpy as jnp
from jax.experimental import pallas as pl
from jax.experimental.pallas import tpu as pltpu

_LANES = 128
_TILE_BUDGET_BYTES = 4 * 1024 * 1024   # per x/out tile; ~16 MiB resident with double buffering
_VMEM_LIMIT_BYTES = 32 * 1024 * 1024   # raises v5e's 16 MiB scoped default; matches v6e/v7x defaults
_SMALL_BYTES = 4 << 20                 # below this, XLA fusion beats kernel launch/pipeline cost
_MIN_BATCH_BLOCKS = 8                  # keep >=8 batch grid steps on big streams (megacore + pipeline)


def _gate_kernel(x_ref, g_ref, o_ref):
    # y = x * gate; gate is a (1, block_f) f32 row broadcast across the batch (sublane) axis.
    # Multiply in f32 so non-binary float masks with low-precision inputs match an f32 reference.
    o_ref[...] = (x_ref[...].astype(jnp.float32) * g_ref[...]).astype(o_ref.dtype)


def _pick_block_f(dim: int, max_block: int) -> int:
    """Largest multiple of 128 that divides `dim` and is <= max_block; `dim` itself if it fits.

    `dim` is always a multiple of 128 here, so this never falls back to an oversized tile.
    """
    if dim <= max_block:
        return dim
    b = (max_block // _LANES) * _LANES
    while b > _LANES:
        if dim % b == 0:
            return b
        b -= _LANES
    return _LANES


def my_discrete_my_gate(x, weight, mask, *, block_b=None, block_f=None, use_pallas=None):
    """x: (B, F); weight, mask: (F,). Returns mask * (weight >= 0) * x, shape (B, F), dtype of x."""
    B, F = x.shape
    itemsize = jnp.dtype(x.dtype).itemsize

    # Fold the hard gate once per call: tiny (F,) f32 vector; removes one replicated input
    # stream and the per-tile compare from the kernel.
    gate = mask.astype(jnp.float32) * (weight >= 0).astype(jnp.float32)  # (F,) f32

    if use_pallas is None:
        use_pallas = (B * F * itemsize) >= _SMALL_BYTES
    if not use_pallas:
        # Tiny problem: let XLA fuse the elementwise expression (kernel would be pure overhead).
        return (x.astype(jnp.float32) * gate[None, :]).astype(x.dtype)

    # ---- lane-dense repack: make the last (lane) dim a multiple of 128 ----
    Bp, Fp = B, F
    x2 = x
    gate_row = gate
    pad_f = 0
    if F % _LANES != 0:
        g = _LANES // math.gcd(F, _LANES)
        if B % g == 0:
            # Zero-cost repack: fold g batch rows into one lane-dense row.
            Bp, Fp = B // g, F * g
            x2 = x.reshape(Bp, Fp)
            gate_row = jnp.tile(gate, g)
        else:
            # Zero-pad F to the next lane multiple: keeps stores as full-width unmasked vst
            # (biggest measured single lever) for <128 extra lanes of traffic per row.
            pad_f = _LANES - (F % _LANES)
            Fp = F + pad_f
            x2 = jnp.pad(x, ((0, 0), (0, pad_f)))
            gate_row = jnp.pad(gate, (0, pad_f))
    gate2 = gate_row.reshape(1, Fp)

    # ---- tile selection (VMEM-budgeted, alignment-aware, robust to awkward dims) ----
    align_b = max(8, 32 // itemsize)  # sublane packing: 8 rows (4B), 16 (2B), 32 (1B)
    if block_f is None:
        # Prefer full-width rows: contiguous HBM tiles, effectively 1-D grid, gate loaded once.
        max_f = max(_LANES, (_TILE_BUDGET_BYTES // (align_b * itemsize)) // _LANES * _LANES)
        block_f = _pick_block_f(Fp, max_f)
    else:
        assert block_f == Fp or block_f % _LANES == 0

    if block_b is None:
        max_bb = max(align_b,
                     (_TILE_BUDGET_BYTES // max(1, block_f * itemsize)) // align_b * align_b)
        if Bp > _MIN_BATCH_BLOCKS * align_b:
            # Keep at least _MIN_BATCH_BLOCKS batch grid steps so v7x megacore gets both
            # TensorCores and the DMA pipeline stays warm.
            split_cap = max(align_b, (pl.cdiv(Bp, _MIN_BATCH_BLOCKS) // align_b) * align_b)
            max_bb = min(max_bb, split_cap)
        block_b = Bp if Bp <= max_bb else max_bb
    else:
        assert block_b == Bp or block_b % align_b == 0

    # Ragged last blocks are handled by the cdiv grid (masked stores), so no divisibility
    # requirement -> no oversized-tile fallback, no scoped-VMEM blowups on prime-ish dims.
    # Batch is the fastest-varying (last) grid axis: the gate block index (0, j) stays
    # constant across consecutive steps, so Pallas reuses its DMA instead of re-fetching.
    grid = (pl.cdiv(Fp, block_f), pl.cdiv(Bp, block_b))

    out2 = pl.pallas_call(
        _gate_kernel,
        out_shape=jax.ShapeDtypeStruct((Bp, Fp), x.dtype),
        grid_spec=pltpu.PrefetchScalarGridSpec(
            num_scalar_prefetch=0,
            grid=grid,
            in_specs=[
                pl.BlockSpec((block_b, block_f), lambda j, i: (i, j)),  # x tile
                pl.BlockSpec((1, block_f), lambda j, i: (0, j)),        # gate row (reused over i)
            ],
            out_specs=pl.BlockSpec((block_b, block_f), lambda j, i: (i, j)),
        ),
        compiler_params=pltpu.CompilerParams(
            dimension_semantics=("parallel", "parallel"),
            vmem_limit_bytes=_VMEM_LIMIT_BYTES,
        ),
        cost_estimate=pl.CostEstimate(
            flops=Bp * Fp,
            transcendentals=0,
            bytes_accessed=2 * Bp * Fp * itemsize + Fp * 4,
        ),
    )(x2, gate2)

    if pad_f:
        out2 = out2[:, :F]
    return out2.reshape(B, F)


if __name__ == "__main__":
    key = jax.random.PRNGKey(0)
    kx, kw, kx2, kw2, km2 = jax.random.split(key, 5)

    # --- shape implied by the module: a (batch, out_features) activation gated per-feature ---
    B, F = 8, 32

    # deterministic parameter init, matching nn.init.uniform_(weight, -0.1, 0.1)
    weight = jax.random.uniform(kw, (F,), dtype=jnp.float32, minval=-0.1, maxval=0.1)
    mask = jnp.ones((F,), dtype=jnp.float32)
    x = jax.random.normal(kx, (B, F), dtype=jnp.float32)

    # Force the Pallas path so the kernel (lane-dense repack branch) is exercised at demo size.
    out = jax.block_until_ready(my_discrete_my_gate(x, weight, mask, use_pallas=True))
    ref = mask[None, :] * (weight >= 0).astype(jnp.float32)[None, :] * x
    assert out.shape == (B, F)
    assert jnp.array_equal(out, ref), "mismatch vs reference (repack path)"

    # --- exercise the zero-pad + ragged-batch (cdiv grid) path with a partially-zeroed mask ---
    B2, F2 = 10, 48
    w2 = jax.random.uniform(kw2, (F2,), dtype=jnp.float32, minval=-0.1, maxval=0.1)
    m2 = (jax.random.uniform(km2, (F2,)) > 0.3).astype(jnp.float32)
    x_2 = jax.random.normal(kx2, (B2, F2), dtype=jnp.float32)
    out2 = jax.block_until_ready(my_discrete_my_gate(x_2, w2, m2, block_b=8, use_pallas=True))
    ref2 = m2[None, :] * (w2 >= 0).astype(jnp.float32)[None, :] * x_2
    assert out2.shape == (B2, F2)
    assert jnp.array_equal(out2, ref2), "mismatch vs reference (pad + ragged-batch path)"

    # --- auto-dispatch small-input fast path ---
    out_small = jax.block_until_ready(my_discrete_my_gate(x, weight, mask))
    assert jnp.array_equal(out_small, ref), "fast-path mismatch vs reference"

    print("KERNEL_OK")
</pallas_src>

<mosaic_0001>
module attributes {stable_mosaic.version = 11 : i64} {
  func.func @_gate_kernel(%arg0: i32, %arg1: i32, %arg2: memref<2x128xf32, #tpu.memory_space<vmem>>, %arg3: memref<1x128xf32, #tpu.memory_space<vmem>>, %arg4: memref<2x128xf32, #tpu.memory_space<vmem>>) attributes {dimension_semantics = [#tpu.dimension_semantics<parallel>, #tpu.dimension_semantics<parallel>], iteration_bounds = array<i64: 1, 1>, scalar_prefetch = 0 : i64, scratch_operands = 0 : i64, tpu.core_type = #tpu.core_type<tc>, window_params = [{transform_indices = @transform_0, window_bounds = array<i64: 2, 128>}, {transform_indices = @transform_1, window_bounds = array<i64: 1, 128>}, {transform_indices = @transform_2, window_bounds = array<i64: 2, 128>}]} {
    %c0 = arith.constant 0 : index
    %c0_0 = arith.constant 0 : index
    %0 = vector.load %arg2[%c0, %c0_0] : memref<2x128xf32, #tpu.memory_space<vmem>>, vector<2x128xf32>
    %c0_1 = arith.constant 0 : index
    %c0_2 = arith.constant 0 : index
    %1 = vector.load %arg3[%c0_1, %c0_2] : memref<1x128xf32, #tpu.memory_space<vmem>>, vector<1x128xf32>
    %2 = vector.broadcast %1 : vector<1x128xf32> to vector<2x128xf32>
    %3 = arith.mulf %0, %2 : vector<2x128xf32>
    %c0_3 = arith.constant 0 : index
    %c0_4 = arith.constant 0 : index
    %4 = vector.load %arg4[%c0_3, %c0_4] : memref<2x128xf32, #tpu.memory_space<vmem>>, vector<2x128xf32>
    tpu.vector_store %arg4[%c0_3, %c0_4], %3 {strides = array<i32>} : memref<2x128xf32, #tpu.memory_space<vmem>>, vector<2x128xf32>,
    return
  }
  func.func @transform_0(%arg0: i32, %arg1: i32) -> (i32, i32) {
    %c0_i32 = arith.constant 0 : i32
    return %arg1, %arg0 : i32, i32
  }
  func.func @transform_1(%arg0: i32, %arg1: i32) -> (i32, i32) {
    %c0_i32 = arith.constant 0 : i32
    %c0_i32_0 = arith.constant 0 : i32
    return %c0_i32, %arg0 : i32, i32
  }
  func.func @transform_2(%arg0: i32, %arg1: i32) -> (i32, i32) {
    %c0_i32 = arith.constant 0 : i32
    return %arg1, %arg0 : i32, i32
  }
}

</mosaic_0001>

<bundles_post_ra>
// kernel: tpu_custom_call.1
= control target key start
LH: loop header
LB: loop body
LE: loop exit
PB: predicated region body
PF: predicated region fallthrough
CT: control target
= control target key end

     0   :  { %7 = vsyncpa [#allocation3], 0  ;;  %s144_s0 = inlined_call_operand.hbm [shape: f32[2,128], index: 0, kind: input, shape index: {}]   ;;  %s145_s1 = inlined_call_operand.vmem [shape: f32[1,128], index: 1, kind: input, shape index: {}]   ;;  %s146_s2 = inlined_call_operand.hbm [shape: f32[2,128], index: 2, kind: output, shape index: {}]  }
   0x1   :  { %8 = vsyncpa [#allocation4], 0  ;;  %s100_s9 = smov [#allocation2]   ;;  %s52_s13 = scalar_lea.hbm %s144_s0, 32 }
   0x2   :  { %s15_s10 = sshll.u32 %s100_s9, 4  ;;  %p53_p0 = scmp.ne.s32.totalorder %s144_s0, %s52_s13  ;;  %s16_s10 = int_to_ptr.vmem [resolvable:$true] %s15_s10 }
   0x3   :  { %p56_p1 = scmp.lt.u32.totalorder %s52_s13, %s144_s0 }
   0x5   :  { %p58_p2 = pnand %p56_p1, %p53_p0 }
   0x7   :  { %61 = shalt.err (!%p58_p2)
}
   0x8   :  { %s62_s18 = scalar_lea.vmem %s16_s10, 32  ;;  %p67_p4 = scmp.lt.s32.totalorder %s16_s10, %s16_s10 }
   0x9   :  { %p63_p3 = scmp.ne.s32.totalorder %s16_s10, %s62_s18  ;;  %p68_p5 = scmp.lt.s32.totalorder %s62_s18, %s62_s18 }
   0xb   :  { %p69_p6 = por %p68_p5, %p67_p4 }
   0xd   :  { %p70_p7 = pnand %p69_p6, %p63_p3 }
   0xf   :  { %73 = shalt.err (!%p70_p7)
}
  0x10   :  { %18 = dma.hbm_to_vmem [thread:$0]  %s144_s0, 32, %s16_s10, [#allocation3]  }
  0x11   :  { %96 = dma.done.wait [#allocation3], 32  }
  0x12   :  { %97 = vsyncadd [#allocation3], 4294967264  ;;  %s101_s21 = smov [#allocation5]   ;;  %v24_v0 = vld [vmem:[#allocation2] sm:$0x3] }
  0x13   :  { %s40_s22 = sshll.u32 %s101_s21, 4  ;;  %v49_v1 = vld [vmem:[%s145_s1] ss:$0 sm:$0xff]  ;;  %s41_s22 = int_to_ptr.vmem [resolvable:$true] %s40_s22 }
  0x14   :  { %v32_v2 = vmul.f32 %v49_v1, %v24_v0  ;;  %s74_s25 = scalar_lea.vmem %s41_s22, 32  ;;  %p79_p9 = scmp.lt.s32.totalorder %s41_s22, %s41_s22 }
  0x15   :  { %p75_p8 = scmp.ne.s32.totalorder %s41_s22, %s74_s25  ;;  %p80_p10 = scmp.lt.s32.totalorder %s74_s25, %s74_s25 }
  0x16   :  { %33 = vst [vmem:[#allocation5] sm:$0x3] %v32_v2 }
  0x17   :  { %p81_p11 = por %p80_p10, %p79_p9 }
  0x19   :  { %p82_p12 = pnand %p81_p11, %p75_p8 }
  0x1b   :  { %85 = shalt.err (!%p82_p12)
}
  0x1c   :  { %s86_s27 = scalar_lea.hbm %s146_s2, 32 }
  0x1d   :  { %p87_p13 = scmp.ne.s32.totalorder %s146_s2, %s86_s27  ;;  %p90_p0 = scmp.lt.u32.totalorder %s86_s27, %s146_s2 }
  0x1f   :  { %p92_p1 = pnand %p90_p0, %p87_p13 }
  0x21   :  { %95 = shalt.err (!%p92_p1)
}
  0x22   :  { %43 = dma.vmem_to_hbm [thread:$0]  %s41_s22, 32, %s146_s2, [#allocation4]  }
  0x23   :  { %98 = dma.done.wait [#allocation4], 32  }
  0x24   :  { %99 = vsyncadd [#allocation4], 4294967264 }
  0x25   :  { %47 = vsyncpa [#allocation3], 1 }
  0x26   :  { %48 = vsyncpa [#allocation4], 1 }

</bundles_post_ra>
